<compile_context>
chip_gen: v5e
topology: v5e:2x2
jax: 0.10.0
libtpu: 0.0.40
codegen_flags: <defaults>
</compile_context>

<pallas_src>
import functools

import jax
import jax.numpy as jnp
from jax import lax
from jax.experimental import pallas as pl
from jax.experimental.pallas import tpu as pltpu

SCALE = 0.18215                     # LatentGrowthVAE.scale
PATCH = 8                           # VAE downsamples spatial dims by 8
IMG_C = 3
LATENT_C = 4
PATCH_DIM = IMG_C * PATCH * PATCH   # 192
ENC_OUT = 2 * LATENT_C              # fused mean||logvar projection -> 8 columns
MAX_ROW_TILE = 2048                 # rows per grid step (bigger tiles amortize per-step overhead)
ROW_ALIGN = 16                      # sublane alignment (covers bf16 packing)
VMEM_LIMIT_BYTES = 64 * 1024 * 1024 # explicit scoped-VMEM limit (safe on v5e/v6e/v7x)


# ----------------------------- small helpers -----------------------------

def _round_up(x, m):
    return (x + m - 1) // m * m


def _choose_row_tile(rows):
    # Largest tile <= MAX_ROW_TILE, multiple of ROW_ALIGN.
    return min(MAX_ROW_TILE, _round_up(rows, ROW_ALIGN))


# ----------------------------- in-kernel math -----------------------------

def _encode_math(p, w_enc, b_enc, eps):
    # p: (T, 192) patch values in [0, 1] (bf16); cast immediately so the VPU
    # path stays f32 (required on v5e, fine elsewhere).
    x = p.astype(jnp.float32) * 2.0 - 1.0                              # x * 2 - 1
    h = jnp.dot(x, w_enc, preferred_element_type=jnp.float32) + b_enc  # (T, 8)
    mean = h[:, :LATENT_C]
    logvar = jnp.clip(h[:, LATENT_C:], -30.0, 20.0)                    # DiagonalGaussian clamp
    std = jnp.exp(0.5 * logvar)
    return (mean + std * eps) * SCALE                                  # sample() * scale


def _decode_math(z, w_dec, b_dec):
    # Single tiny-K MXU matmul (MXU idle otherwise).
    x = jnp.dot(z * (1.0 / SCALE), w_dec, preferred_element_type=jnp.float32) + b_dec
    x = x * 0.5 + 0.5                                                  # sample / 2 + 0.5
    return jnp.clip(x, 0.0, 1.0)                                       # clip(0, 1)


def _valid_rows_mask(i, tile, rows):
    r = i * tile + lax.broadcasted_iota(jnp.int32, (tile, 1), 0)
    return r < rows                                                    # bool (tile, 1)


# ----------------------------- Pallas kernels -----------------------------

def _fwd_infer_kernel(eps_ref, p_in_ref, w_enc_ref, b_enc_ref,
                      w_dec_ref, b_dec_ref, x_ref):
    """Fused encode(x_in) -> identity growth model -> decode; z stays in vregs."""
    z_in = _encode_math(p_in_ref[...], w_enc_ref[...], b_enc_ref[...], eps_ref[...])
    x_ref[...] = _decode_math(z_in, w_dec_ref[...], b_dec_ref[...])


def _fwd_train_kernel(eps_ref, p_in_ref, p_out_ref, w_enc_ref, b_enc_ref,
                      w_dec_ref, b_dec_ref, x_ref, loss_ref, *, tile, rows):
    """Fused training step: encode x_in & x_out, decode z_pred (= z_in),
    write x_pred patches and per-block partial sums of MSE(z_pred, z_out)
    and L1(x_pred, x_out)."""
    i = pl.program_id(0)
    w_enc = w_enc_ref[...]
    b_enc = b_enc_ref[...]
    eps = eps_ref[...]                                        # (tile, 8)

    z_in = _encode_math(p_in_ref[...], w_enc, b_enc, eps[:, :LATENT_C])
    z_out = _encode_math(p_out_ref[...], w_enc, b_enc, eps[:, LATENT_C:])
    x_pred = _decode_math(z_in, w_dec_ref[...], b_dec_ref[...])
    x_ref[...] = x_pred

    valid = _valid_rows_mask(i, tile, rows)                   # jnp.where masking: garbage
    d = jnp.where(valid, z_in - z_out, 0.0)                   # tail rows cannot poison sums
    mse_part = jnp.sum(d * d)
    l1_part = jnp.sum(jnp.where(
        valid, jnp.abs(x_pred - p_out_ref[...].astype(jnp.float32)), 0.0))

    # Per-block lane-dense partial-sum slab: row 0 = MSE partial, row 1 = L1 partial.
    which = lax.broadcasted_iota(jnp.int32, (1, 2, 128), 1)
    loss_ref[...] = jnp.where(which == 0, mse_part, l1_part)


# ----------------------------- pallas_call wrappers -----------------------------

def _fwd_infer_call(eps, p_in, w_enc, b_enc, w_dec, b_dec, *, tile):
    rows = p_in.shape[0]
    grid = (pl.cdiv(rows, tile),)
    return pl.pallas_call(
        _fwd_infer_kernel,
        out_shape=jax.ShapeDtypeStruct((rows, PATCH_DIM), jnp.float32),
        grid=grid,
        in_specs=[
            pl.BlockSpec((tile, LATENT_C), lambda i: (i, 0)),
            pl.BlockSpec((tile, PATCH_DIM), lambda i: (i, 0)),
            pl.BlockSpec((PATCH_DIM, ENC_OUT), lambda i: (0, 0)),
            pl.BlockSpec((1, ENC_OUT), lambda i: (0, 0)),
            pl.BlockSpec((LATENT_C, PATCH_DIM), lambda i: (0, 0)),
            pl.BlockSpec((1, PATCH_DIM), lambda i: (0, 0)),
        ],
        out_specs=pl.BlockSpec((tile, PATCH_DIM), lambda i: (i, 0)),
        compiler_params=pltpu.CompilerParams(
            dimension_semantics=("parallel",),
            vmem_limit_bytes=VMEM_LIMIT_BYTES),
    )(eps, p_in, w_enc, b_enc, w_dec, b_dec)


def _fwd_train_call(eps, p_in, p_out, w_enc, b_enc, w_dec, b_dec, *, tile, rows):
    num_blocks = pl.cdiv(rows, tile)
    kernel = functools.partial(_fwd_train_kernel, tile=tile, rows=rows)
    return pl.pallas_call(
        kernel,
        out_shape=(jax.ShapeDtypeStruct((rows, PATCH_DIM), jnp.float32),
                   jax.ShapeDtypeStruct((num_blocks, 2, 128), jnp.float32)),
        grid=(num_blocks,),
        in_specs=[
            pl.BlockSpec((tile, ENC_OUT), lambda i: (i, 0)),          # eps (rows, 8)
            pl.BlockSpec((tile, PATCH_DIM), lambda i: (i, 0)),        # p_in  (bf16)
            pl.BlockSpec((tile, PATCH_DIM), lambda i: (i, 0)),        # p_out (bf16, also L1 target)
            pl.BlockSpec((PATCH_DIM, ENC_OUT), lambda i: (0, 0)),
            pl.BlockSpec((1, ENC_OUT), lambda i: (0, 0)),
            pl.BlockSpec((LATENT_C, PATCH_DIM), lambda i: (0, 0)),
            pl.BlockSpec((1, PATCH_DIM), lambda i: (0, 0)),
        ],
        out_specs=(
            pl.BlockSpec((tile, PATCH_DIM), lambda i: (i, 0)),
            pl.BlockSpec((1, 2, 128), lambda i: (i, 0, 0)),           # per-block loss partials
        ),
        compiler_params=pltpu.CompilerParams(
            dimension_semantics=("parallel",),                        # megacore-shardable (v7x)
            vmem_limit_bytes=VMEM_LIMIT_BYTES),
    )(eps, p_in, p_out, w_enc, b_enc, w_dec, b_dec)


# ----------------------------- glue: patchify / forward -----------------------------

def _patchify(x):
    # x: [NB, 3, H, W] -> [NB*Hp*Wp, 3*8*8]
    NB, C, H, W = x.shape
    Hp, Wp = H // PATCH, W // PATCH
    x = x.reshape(NB, C, Hp, PATCH, Wp, PATCH)
    x = x.transpose(0, 2, 4, 1, 3, 5)            # [NB, Hp, Wp, C, 8, 8]
    return x.reshape(NB * Hp * Wp, C * PATCH * PATCH), (NB, Hp, Wp)


def _unpatchify(p, NB, Hp, Wp):
    x = p.reshape(NB, Hp, Wp, IMG_C, PATCH, PATCH)
    x = x.transpose(0, 3, 1, 4, 2, 5)            # [NB, C, Hp, 8, Wp, 8]
    return x.reshape(NB, IMG_C, Hp * PATCH, Wp * PATCH)


def latent_growth_vae_forward(params, x_in, t_in, t_out, x_out=None, *, key):
    """
    x_in : [N, B, 3, H, W]
    t_in : [N, B]
    t_out: [M, B] (unused by the identity latent growth model)
    x_out: optional [M, B, 3, H, W]
    """
    lead = x_in.shape[:-3]
    C, H, W = x_in.shape[-3:]
    # bf16 cast before the patchify transpose -> half the bytes moved by the
    # XLA fusion and half the DMA bytes into the kernel.
    x_in2 = x_in.reshape((-1, C, H, W)).astype(jnp.bfloat16)
    p_in, (NB, Hp, Wp) = _patchify(x_in2)
    rows = p_in.shape[0]
    tile = _choose_row_tile(rows)

    if x_out is None:
        eps = jax.random.normal(key, (rows, LATENT_C), jnp.float32)
        xp = _fwd_infer_call(eps, p_in, params["w_enc"], params["b_enc"],
                             params["w_dec"], params["b_dec"], tile=tile)
        return _unpatchify(xp, NB, Hp, Wp).reshape(lead + (IMG_C, H, W))

    assert x_in.shape == x_out.shape, "identity latent growth model requires M == N"
    x_out2 = x_out.reshape((-1, C, H, W)).astype(jnp.bfloat16)
    p_out, _ = _patchify(x_out2)

    # One eps stream for both encodes: cols 0:4 -> z_in, cols 4:8 -> z_out.
    eps = jax.random.normal(key, (rows, ENC_OUT), jnp.float32)

    xp, loss_parts = _fwd_train_call(
        eps, p_in, p_out, params["w_enc"], params["b_enc"],
        params["w_dec"], params["b_dec"], tile=tile, rows=rows)

    x_pred = _unpatchify(xp, NB, Hp, Wp).reshape(lead + (IMG_C, H, W))
    losses = {
        "embedding_loss": loss_parts[:, 0, 0].sum() / (rows * LATENT_C),       # F.mse_loss
        "reconstruction_loss": loss_parts[:, 1, 0].sum() / (rows * PATCH_DIM), # F.l1_loss
    }
    return x_pred, losses


# ----------------------------- deterministic parameter init -----------------------------

def init_params(key):
    k1, k2, k3 = jax.random.split(key, 3)
    w_mean = jax.random.normal(k1, (PATCH_DIM, LATENT_C), jnp.float32) * 0.05
    w_logvar = jax.random.normal(k2, (PATCH_DIM, LATENT_C), jnp.float32) * 0.05
    return {
        # fused mean||logvar projection: one matmul instead of two
        "w_enc": jnp.concatenate([w_mean, w_logvar], axis=1),               # [192, 8]
        "b_enc": jnp.concatenate([jnp.zeros((1, LATENT_C), jnp.float32),
                                  jnp.full((1, LATENT_C), -1.0, jnp.float32)], axis=1),
        "w_dec": jax.random.normal(k3, (LATENT_C, PATCH_DIM), jnp.float32) * 0.05,
        "b_dec": jnp.zeros((1, PATCH_DIM), jnp.float32),
    }


if __name__ == "__main__":
    key = jax.random.PRNGKey(0)
    kp, kx, ky, ke = jax.random.split(key, 4)

    N, B, C, H, W = 2, 2, 3, 16, 16
    params = init_params(kp)
    x_in = jax.random.uniform(kx, (N, B, C, H, W), dtype=jnp.float32)
    x_out = jax.random.uniform(ky, (N, B, C, H, W), dtype=jnp.float32)
    t_in = jnp.broadcast_to(jnp.arange(N, dtype=jnp.float32)[:, None], (N, B))
    t_out = t_in

    # training path (with x_out): single fused encode+decode+loss kernel
    x_pred, losses = latent_growth_vae_forward(params, x_in, t_in, t_out, x_out, key=ke)
    jax.block_until_ready((x_pred, losses))
    assert x_pred.shape == (N, B, C, H, W)
    assert x_pred.dtype == jnp.float32
    assert float(jnp.min(x_pred)) >= 0.0 and float(jnp.max(x_pred)) <= 1.0
    assert losses["embedding_loss"].shape == () and losses["reconstruction_loss"].shape == ()
    assert float(losses["embedding_loss"]) >= 0.0
    assert float(losses["reconstruction_loss"]) >= 0.0

    # inference path (x_out=None): single fused encode+decode kernel
    x_only = latent_growth_vae_forward(params, x_in, t_in, t_out, key=ke)
    jax.block_until_ready(x_only)
    assert x_only.shape == (N, B, C, H, W)
    assert float(jnp.min(x_only)) >= 0.0 and float(jnp.max(x_only)) <= 1.0

    print("KERNEL_OK")
</pallas_src>

<mosaic_0001>
module attributes {stable_mosaic.version = 11 : i64} {
  func.func @_fwd_train_kernel(%arg0: i32, %arg1: memref<16x8xf32, #tpu.memory_space<vmem>>, %arg2: memref<16x192xbf16, #tpu.memory_space<vmem>>, %arg3: memref<16x192xbf16, #tpu.memory_space<vmem>>, %arg4: memref<192x8xf32, #tpu.memory_space<vmem>>, %arg5: memref<1x8xf32, #tpu.memory_space<vmem>>, %arg6: memref<4x192xf32, #tpu.memory_space<vmem>>, %arg7: memref<1x192xf32, #tpu.memory_space<vmem>>, %arg8: memref<16x192xf32, #tpu.memory_space<vmem>>, %arg9: memref<1x2x128xf32, #tpu.memory_space<vmem>>) attributes {dimension_semantics = [#tpu.dimension_semantics<parallel>], iteration_bounds = array<i64: 1>, scalar_prefetch = 0 : i64, scratch_operands = 0 : i64, tpu.core_type = #tpu.core_type<tc>, window_params = [{transform_indices = @transform_0, window_bounds = array<i64: 16, 8>}, {transform_indices = @transform_1, window_bounds = array<i64: 16, 192>}, {transform_indices = @transform_2, window_bounds = array<i64: 16, 192>}, {pipeline_mode = #tpu.pipeline_mode<synchronous>, transform_indices = @transform_3, window_bounds = array<i64: 192, 8>}, {pipeline_mode = #tpu.pipeline_mode<synchronous>, transform_indices = @transform_4, window_bounds = array<i64: 1, 8>}, {pipeline_mode = #tpu.pipeline_mode<synchronous>, transform_indices = @transform_5, window_bounds = array<i64: 4, 192>}, {pipeline_mode = #tpu.pipeline_mode<synchronous>, transform_indices = @transform_6, window_bounds = array<i64: 1, 192>}, {transform_indices = @transform_7, window_bounds = array<i64: 16, 192>}, {transform_indices = @transform_8, window_bounds = array<i64: 1, 2, 128>}]} {
    %c0 = arith.constant 0 : index
    %c0_0 = arith.constant 0 : index
    %0 = vector.load %arg4[%c0, %c0_0] : memref<192x8xf32, #tpu.memory_space<vmem>>, vector<192x8xf32>
    %c0_1 = arith.constant 0 : index
    %c0_2 = arith.constant 0 : index
    %1 = vector.load %arg5[%c0_1, %c0_2] : memref<1x8xf32, #tpu.memory_space<vmem>>, vector<1x8xf32>
    %c0_3 = arith.constant 0 : index
    %c0_4 = arith.constant 0 : index
    %2 = vector.load %arg1[%c0_3, %c0_4] : memref<16x8xf32, #tpu.memory_space<vmem>>, vector<16x8xf32>
    %c0_5 = arith.constant 0 : index
    %c0_6 = arith.constant 0 : index
    %3 = vector.load %arg2[%c0_5, %c0_6] : memref<16x192xbf16, #tpu.memory_space<vmem>>, vector<16x192xbf16>
    %4 = vector.extract_strided_slice %2 {offsets = [0, 0], sizes = [16, 4], strides = [1, 1]} : vector<16x8xf32> to vector<16x4xf32>
    %5 = arith.extf %3 : vector<16x192xbf16> to vector<16x192xf32>
    %cst = arith.constant 2.000000e+00 : f32
    %6 = vector.broadcast %cst : f32 to vector<16x192xf32>
    %7 = arith.mulf %5, %6 : vector<16x192xf32>
    %cst_7 = arith.constant 1.000000e+00 : f32
    %8 = vector.broadcast %cst_7 : f32 to vector<16x192xf32>
    %9 = arith.subf %7, %8 : vector<16x192xf32>
    %cst_8 = arith.constant dense<0.000000e+00> : vector<16x8xf32>
    %10 = tpu.matmul %9, %0, %cst_8 {dimension_numbers = #tpu.dot_dimension_numbers<[1], [0], [0], [1], [0, 0, 1, 1], [], []>} : vector<16x192xf32>, vector<192x8xf32>, vector<16x8xf32> -> vector<16x8xf32>
    %11 = vector.broadcast %1 : vector<1x8xf32> to vector<16x8xf32>
    %12 = arith.addf %10, %11 : vector<16x8xf32>
    %13 = vector.extract_strided_slice %12 {offsets = [0, 0], sizes = [16, 4], strides = [1, 1]} : vector<16x8xf32> to vector<16x4xf32>
    %14 = vector.extract_strided_slice %12 {offsets = [0, 4], sizes = [16, 4], strides = [1, 1]} : vector<16x8xf32> to vector<16x4xf32>
    %cst_9 = arith.constant -3.000000e+01 : f32
    %cst_10 = arith.constant 2.000000e+01 : f32
    %15 = vector.broadcast %cst_9 : f32 to vector<16x4xf32>
    %16 = arith.maximumf %15, %14 : vector<16x4xf32>
    %17 = vector.broadcast %cst_10 : f32 to vector<16x4xf32>
    %18 = arith.minimumf %17, %16 : vector<16x4xf32>
    %cst_11 = arith.constant 5.000000e-01 : f32
    %19 = vector.broadcast %cst_11 : f32 to vector<16x4xf32>
    %20 = arith.mulf %19, %18 : vector<16x4xf32>
    %21 = math.exp %20 : vector<16x4xf32>
    %22 = arith.mulf %21, %4 : vector<16x4xf32>
    %23 = arith.addf %13, %22 : vector<16x4xf32>
    %cst_12 = arith.constant 1.821500e-01 : f32
    %24 = vector.broadcast %cst_12 : f32 to vector<16x4xf32>
    %25 = arith.mulf %23, %24 : vector<16x4xf32>
    %c0_13 = arith.constant 0 : index
    %c0_14 = arith.constant 0 : index
    %26 = vector.load %arg3[%c0_13, %c0_14] : memref<16x192xbf16, #tpu.memory_space<vmem>>, vector<16x192xbf16>
    %27 = vector.extract_strided_slice %2 {offsets = [0, 4], sizes = [16, 4], strides = [1, 1]} : vector<16x8xf32> to vector<16x4xf32>
    %28 = arith.extf %26 : vector<16x192xbf16> to vector<16x192xf32>
    %cst_15 = arith.constant 2.000000e+00 : f32
    %29 = vector.broadcast %cst_15 : f32 to vector<16x192xf32>
    %30 = arith.mulf %28, %29 : vector<16x192xf32>
    %cst_16 = arith.constant 1.000000e+00 : f32
    %31 = vector.broadcast %cst_16 : f32 to vector<16x192xf32>
    %32 = arith.subf %30, %31 : vector<16x192xf32>
    %cst_17 = arith.constant dense<0.000000e+00> : vector<16x8xf32>
    %33 = tpu.matmul %32, %0, %cst_17 {dimension_numbers = #tpu.dot_dimension_numbers<[1], [0], [0], [1], [0, 0, 1, 1], [], []>} : vector<16x192xf32>, vector<192x8xf32>, vector<16x8xf32> -> vector<16x8xf32>
    %34 = vector.broadcast %1 : vector<1x8xf32> to vector<16x8xf32>
    %35 = arith.addf %33, %34 : vector<16x8xf32>
    %36 = vector.extract_strided_slice %35 {offsets = [0, 0], sizes = [16, 4], strides = [1, 1]} : vector<16x8xf32> to vector<16x4xf32>
    %37 = vector.extract_strided_slice %35 {offsets = [0, 4], sizes = [16, 4], strides = [1, 1]} : vector<16x8xf32> to vector<16x4xf32>
    %cst_18 = arith.constant -3.000000e+01 : f32
    %cst_19 = arith.constant 2.000000e+01 : f32
    %38 = vector.broadcast %cst_18 : f32 to vector<16x4xf32>
    %39 = arith.maximumf %38, %37 : vector<16x4xf32>
    %40 = vector.broadcast %cst_19 : f32 to vector<16x4xf32>
    %41 = arith.minimumf %40, %39 : vector<16x4xf32>
    %cst_20 = arith.constant 5.000000e-01 : f32
    %42 = vector.broadcast %cst_20 : f32 to vector<16x4xf32>
    %43 = arith.mulf %42, %41 : vector<16x4xf32>
    %44 = math.exp %43 : vector<16x4xf32>
    %45 = arith.mulf %44, %27 : vector<16x4xf32>
    %46 = arith.addf %36, %45 : vector<16x4xf32>
    %cst_21 = arith.constant 1.821500e-01 : f32
    %47 = vector.broadcast %cst_21 : f32 to vector<16x4xf32>
    %48 = arith.mulf %46, %47 : vector<16x4xf32>
    %c0_22 = arith.constant 0 : index
    %c0_23 = arith.constant 0 : index
    %49 = vector.load %arg6[%c0_22, %c0_23] : memref<4x192xf32, #tpu.memory_space<vmem>>, vector<4x192xf32>
    %c0_24 = arith.constant 0 : index
    %c0_25 = arith.constant 0 : index
    %50 = vector.load %arg7[%c0_24, %c0_25] : memref<1x192xf32, #tpu.memory_space<vmem>>, vector<1x192xf32>
    %cst_26 = arith.constant 5.4899807 : f32
    %51 = vector.broadcast %cst_26 : f32 to vector<16x4xf32>
    %52 = arith.mulf %25, %51 : vector<16x4xf32>
    %cst_27 = arith.constant dense<0.000000e+00> : vector<16x192xf32>
    %53 = tpu.matmul %52, %49, %cst_27 {dimension_numbers = #tpu.dot_dimension_numbers<[1], [0], [0], [1], [0, 0, 1, 1], [], []>} : vector<16x4xf32>, vector<4x192xf32>, vector<16x192xf32> -> vector<16x192xf32>
    %54 = vector.broadcast %50 : vector<1x192xf32> to vector<16x192xf32>
    %55 = arith.addf %53, %54 : vector<16x192xf32>
    %cst_28 = arith.constant 5.000000e-01 : f32
    %56 = vector.broadcast %cst_28 : f32 to vector<16x192xf32>
    %57 = arith.mulf %55, %56 : vector<16x192xf32>
    %cst_29 = arith.constant 5.000000e-01 : f32
    %58 = vector.broadcast %cst_29 : f32 to vector<16x192xf32>
    %59 = arith.addf %57, %58 : vector<16x192xf32>
    %cst_30 = arith.constant 0.000000e+00 : f32
    %cst_31 = arith.constant 1.000000e+00 : f32
    %60 = vector.broadcast %cst_30 : f32 to vector<16x192xf32>
    %61 = arith.maximumf %60, %59 : vector<16x192xf32>
    %62 = vector.broadcast %cst_31 : f32 to vector<16x192xf32>
    %63 = arith.minimumf %62, %61 : vector<16x192xf32>
    %c0_32 = arith.constant 0 : index
    %c0_33 = arith.constant 0 : index
    %64 = vector.load %arg8[%c0_32, %c0_33] : memref<16x192xf32, #tpu.memory_space<vmem>>, vector<16x192xf32>
    tpu.vector_store %arg8[%c0_32, %c0_33], %63 {strides = array<i32>} : memref<16x192xf32, #tpu.memory_space<vmem>>, vector<16x192xf32>,
    %c16_i32 = arith.constant 16 : i32
    %65 = arith.muli %arg0, %c16_i32 : i32
    %66 = tpu.iota {dimensions = array<i32: 0>} : vector<16x1xi32>
    %67 = vector.broadcast %65 : i32 to vector<16x1xi32>
    %68 = arith.addi %67, %66 : vector<16x1xi32>
    %c16_i32_34 = arith.constant 16 : i32
    %69 = vector.broadcast %c16_i32_34 : i32 to vector<16x1xi32>
    %70 = arith.cmpi slt, %68, %69 : vector<16x1xi32>
    %71 = arith.subf %25, %48 : vector<16x4xf32>
    %cst_35 = arith.constant 0.000000e+00 : f32
    %72 = vector.shape_cast %70 : vector<16x1xi1> to vector<16x1xi1>
    %73 = vector.broadcast %72 : vector<16x1xi1> to vector<16x4xi1>
    %74 = vector.broadcast %cst_35 : f32 to vector<16x4xf32>
    %75 = arith.select %73, %71, %74 : vector<16x4xi1>, vector<16x4xf32>
    %76 = arith.mulf %75, %75 : vector<16x4xf32>
    %77 = vector.shape_cast %76 : vector<16x4xf32> to vector<1x16x4xf32>
    %cst_36 = arith.constant dense<0.000000e+00> : vector<1xf32>
    %78 = vector.multi_reduction <add>, %77, %cst_36 [1, 2] : vector<1x16x4xf32> to vector<1xf32>
    %79 = vector.shape_cast %78 : vector<1xf32> to vector<1x1x1xf32>
    %80 = vector.extract %79[0, 0, 0] : f32 from vector<1x1x1xf32>
    %c0_37 = arith.constant 0 : index
    %c0_38 = arith.constant 0 : index
    %81 = vector.load %arg3[%c0_37, %c0_38] : memref<16x192xbf16, #tpu.memory_space<vmem>>, vector<16x192xbf16>
    %82 = arith.extf %81 : vector<16x192xbf16> to vector<16x192xf32>
    %83 = arith.subf %63, %82 : vector<16x192xf32>
    %84 = math.absf %83 : vector<16x192xf32>
    %cst_39 = arith.constant 0.000000e+00 : f32
    %85 = vector.shape_cast %70 : vector<16x1xi1> to vector<16x1xi1>
    %86 = vector.broadcast %85 : vector<16x1xi1> to vector<16x192xi1>
    %87 = vector.broadcast %cst_39 : f32 to vector<16x192xf32>
    %88 = arith.select %86, %84, %87 : vector<16x192xi1>, vector<16x192xf32>
    %89 = vector.shape_cast %88 : vector<16x192xf32> to vector<1x16x192xf32>
    %cst_40 = arith.constant dense<0.000000e+00> : vector<1xf32>
    %90 = vector.multi_reduction <add>, %89, %cst_40 [1, 2] : vector<1x16x192xf32> to vector<1xf32>
    %91 = vector.shape_cast %90 : vector<1xf32> to vector<1x1x1xf32>
    %92 = vector.extract %91[0, 0, 0] : f32 from vector<1x1x1xf32>
    %93 = tpu.iota {dimensions = array<i32: 1>} : vector<1x2x128xi32>
    %c0_i32 = arith.constant 0 : i32
    %94 = vector.broadcast %c0_i32 : i32 to vector<1x2x128xi32>
    %95 = arith.cmpi eq, %93, %94 : vector<1x2x128xi32>
    %96 = vector.broadcast %80 : f32 to vector<1x2x128xf32>
    %97 = vector.broadcast %92 : f32 to vector<1x2x128xf32>
    %98 = arith.select %95, %96, %97 : vector<1x2x128xi1>, vector<1x2x128xf32>
    %c0_41 = arith.constant 0 : index
    %c0_42 = arith.constant 0 : index
    %c0_43 = arith.constant 0 : index
    %99 = vector.load %arg9[%c0_41, %c0_42, %c0_43] : memref<1x2x128xf32, #tpu.memory_space<vmem>>, vector<1x2x128xf32>
    tpu.vector_store %arg9[%c0_41, %c0_42, %c0_43], %98 {strides = array<i32>} : memref<1x2x128xf32, #tpu.memory_space<vmem>>, vector<1x2x128xf32>,
    return
  }
  func.func @transform_0(%arg0: i32) -> (i32, i32) {
    %c0_i32 = arith.constant 0 : i32
    %c0_i32_0 = arith.constant 0 : i32
    return %arg0, %c0_i32 : i32, i32
  }
  func.func @transform_1(%arg0: i32) -> (i32, i32) {
    %c0_i32 = arith.constant 0 : i32
    %c0_i32_0 = arith.constant 0 : i32
    return %arg0, %c0_i32 : i32, i32
  }
  func.func @transform_2(%arg0: i32) -> (i32, i32) {
    %c0_i32 = arith.constant 0 : i32
    %c0_i32_0 = arith.constant 0 : i32
    return %arg0, %c0_i32 : i32, i32
  }
  func.func @transform_3(%arg0: i32) -> (i32, i32) {
    %c0_i32 = arith.constant 0 : i32
    %c0_i32_0 = arith.constant 0 : i32
    %c0_i32_1 = arith.constant 0 : i32
    return %c0_i32, %c0_i32_0 : i32, i32
  }
  func.func @transform_4(%arg0: i32) -> (i32, i32) {
    %c0_i32 = arith.constant 0 : i32
    %c0_i32_0 = arith.constant 0 : i32
    %c0_i32_1 = arith.constant 0 : i32
    return %c0_i32, %c0_i32_0 : i32, i32
  }
  func.func @transform_5(%arg0: i32) -> (i32, i32) {
    %c0_i32 = arith.constant 0 : i32
    %c0_i32_0 = arith.constant 0 : i32
    %c0_i32_1 = arith.constant 0 : i32
    return %c0_i32, %c0_i32_0 : i32, i32
  }
  func.func @transform_6(%arg0: i32) -> (i32, i32) {
    %c0_i32 = arith.constant 0 : i32
    %c0_i32_0 = arith.constant 0 : i32
    %c0_i32_1 = arith.constant 0 : i32
    return %c0_i32, %c0_i32_0 : i32, i32
  }
  func.func @transform_7(%arg0: i32) -> (i32, i32) {
    %c0_i32 = arith.constant 0 : i32
    %c0_i32_0 = arith.constant 0 : i32
    return %arg0, %c0_i32 : i32, i32
  }
  func.func @transform_8(%arg0: i32) -> (i32, i32, i32) {
    %c0_i32 = arith.constant 0 : i32
    %c0_i32_0 = arith.constant 0 : i32
    %c0_i32_1 = arith.constant 0 : i32
    return %arg0, %c0_i32, %c0_i32_0 : i32, i32, i32
  }
}

</mosaic_0001>

<bundles_post_ra>
// kernel: tpu_custom_call.1
= control target key start
LH: loop header
LB: loop body
LE: loop exit
PB: predicated region body
PF: predicated region fallthrough
CT: control target
= control target key end

     0   :  { %14 = vsyncpa [#allocation3], 0  ;;  %s737_s0 = inlined_call_operand.vmem [shape: f32[16,8], index: 0, kind: input, shape index: {}]   ;;  %s738_s1 = inlined_call_operand.vmem [shape: bf16[16,192], index: 1, kind: input, shape index: {}]   ;;  %s739_s2 = inlined_call_operand.vmem [shape: bf16[16,192], index: 2, kind: input, shape index: {}]   ;;  %s740_s3 = inlined_call_operand.vmem [shape: f32[192,8], index: 3, kind: input, shape index: {}]   ;;  %s741_s4 = inlined_call_operand.vmem [shape: f32[1,8], index: 4, kind: input, shape index: {}]   ;;  %s742_s5 = inlined_call_operand.vmem [shape: f32[4,192], index: 5, kind: input, shape index: {}]   ;;  %s743_s6 = inlined_call_operand.vmem [shape: f32[1,192], index: 6, kind: input, shape index: {}]   ;;  %s744_s7 = inlined_call_operand.hbm [shape: f32[16,192], index: 7, kind: output, shape index: {0}]   ;;  %s745_s8 = inlined_call_operand.hbm [shape: f32[1,2,128], index: 8, kind: output, shape index: {1}]  }
   0x1   :  { %v45_v0 = vld [vmem:[%s740_s3 + $0x78] sm:$0xff]  ;;  %v44_v1 = vld [vmem:[%s740_s3 + $0x70] sm:$0xff]  ;;  %v43_v2 = vld [vmem:[%s740_s3 + $0x68] sm:$0xff] }
   0x2   :  { %81 = vmatpush.msra.mxu0 %v45_v0  ;;  %179 = vmatpush.msra.mxu2 %v45_v0  ;;  %v53_v3 = vld [vmem:[%s740_s3 + $0xb8] sm:$0xff]  ;;  %v42_v4 = vld [vmem:[%s740_s3 + $0x60] sm:$0xff]  ;;  %v52_v5 = vld [vmem:[%s740_s3 + $0xb0] sm:$0xff] }
   0x3   :  { %112 = vmatpush.msra.mxu1 %v53_v3  ;;  %210 = vmatpush.msra.mxu3 %v53_v3  ;;  %v51_v6 = vld [vmem:[%s740_s3 + $0xa8] sm:$0xff]  ;;  %v41_v7 = vld [vmem:[%s740_s3 + $0x58] sm:$0xff]  ;;  %v50_v8 = vld [vmem:[%s740_s3 + $0xa0] sm:$0xff] }
   0x4   :  { %82 = vmatpush.msra.mxu0 %v44_v1  ;;  %180 = vmatpush.msra.mxu2 %v44_v1  ;;  %v612_v9 = vld [vmem:[%s738_s1] sm:$0xff]  ;;  %v40_v10 = vld [vmem:[%s740_s3 + $0x50] sm:$0xff]  ;;  %v49_v13 = vld [vmem:[%s740_s3 + $0x98] sm:$0xff] }
   0x5   :  { %113 = vmatpush.msra.mxu1 %v52_v5  ;;  %211 = vmatpush.msra.mxu3 %v52_v5  ;;  %v60_v11 = vunpack.c.h.bf16 %v612_v9  ;;  %v621_v12 = vld [vmem:[%s739_s2] sm:$0xff]  ;;  %v39_v15 = vld [vmem:[%s740_s3 + $0x48] sm:$0xff]  ;;  %v48_v16 = vld [vmem:[%s740_s3 + $0x90] sm:$0xff] }
   0x6   :  { %83 = vmatpush.msra.mxu0 %v43_v2  ;;  %181 = vmatpush.msra.mxu2 %v43_v2  ;;  %v162_v14 = vunpack.c.h.bf16 %v621_v12 }
   0x7   :  { %114 = vmatpush.msra.mxu1 %v51_v6  ;;  %212 = vmatpush.msra.mxu3 %v51_v6  ;;  %v64_v17 = vmul.f32 2.0, %v60_v11 }
   0x8   :  { %84 = vmatpush.msra.mxu0 %v42_v4  ;;  %182 = vmatpush.msra.mxu2 %v42_v4 }
   0x9   :  { %115 = vmatpush.msra.mxu1 %v50_v8  ;;  %213 = vmatpush.msra.mxu3 %v50_v8 }
   0xa   :  { %85 = vmatpush.msra.mxu0 %v41_v7  ;;  %183 = vmatpush.msra.mxu2 %v41_v7 }
   0xc   :  { %86 = vmatpush.msra.mxu0 %v40_v10  ;;  %184 = vmatpush.msra.mxu2 %v40_v10 }
   0xd   :  { %15 = vsyncpa [#allocation5], 0  ;;  %v38_v18 = vld [vmem:[%s740_s3 + $0x40] sm:$0xff]  ;;  %116 = vmatpush.msra.mxu1 %v49_v13  ;;  %214 = vmatpush.msra.mxu3 %v49_v13  ;;  %v166_v19 = vmul.f32 2.0, %v162_v14  ;;  %v47_v20 = vld [vmem:[%s740_s3 + $0x88] sm:$0xff]  ;;  %v443_v24 = vadd.f32 -1.0, %v64_v17  ;;  %v59_v34 = vunpack.c.l.bf16 %v612_v9  ;;  %v161_v36 = vunpack.c.l.bf16 %v621_v12 }
   0xe   :  { %87 = vmatpush.msra.mxu0 %v39_v15  ;;  %185 = vmatpush.msra.mxu2 %v39_v15  ;;  %v37_v21 = vld [vmem:[%s740_s3 + $0x38] sm:$0xff]  ;;  %v58_v22 = vld [vmem:[%s738_s1 + $0x8] sm:$0xff]  ;;  %v46_v23 = vld [vmem:[%s740_s3 + $0x80] sm:$0xff]  ;;  %vm74_vm0 = vcmask 523264   ;;  %s531_s9 = smov 4   ;;  %vm269_vm1 = vcmask 1043456  }
   0xf   :  { %117 = vmatpush.msra.mxu1 %v48_v16  ;;  %215 = vmatpush.msra.mxu3 %v48_v16  ;;  %v62_v25 = vunpack.c.h.bf16 %v58_v22  ;;  %v653_v26 = vld [vmem:[%s739_s2 + $0x8] sm:$0xff]  ;;  %v36_v27 = vld [vmem:[%s740_s3 + $0x30] sm:$0xff]  ;;  %v449_v28 = vadd.f32 -1.0, %v166_v19  ;;  %v665_v31 = vld [vmem:[%s737_s0] sm:$0xff]  ;;  %v63_v40 = vmul.f32 2.0, %v59_v34  ;;  %v165_v42 = vmul.f32 2.0, %v161_v36 }
  0x10   :  { %88 = vmatpush.msra.mxu0 %v38_v18  ;;  %186 = vmatpush.msra.mxu2 %v38_v18  ;;  %v164_v29 = vunpack.c.h.bf16 %v653_v26  ;;  %v35_v30 = vld [vmem:[%s740_s3 + $0x28] sm:$0xff]  ;;  %v34_v33 = vld [vmem:[%s740_s3 + $0x20] sm:$0xff]  ;;  %v33_v37 = vld [vmem:[%s740_s3 + $0x18] sm:$0xff]  ;;  %v61_v47 = vunpack.c.l.bf16 %v58_v22  ;;  %v163_v49 = vunpack.c.l.bf16 %v653_v26  ;;  %vm262_vm2 = vcmask 31744   ;;  %s414_s26 = sshll.u32 %s744_s7, 4  ;;  %s534_s1 = smov 256   ;;  %s415_s26 = int_to_ptr.hbm [resolvable:$true] %s414_s26 }
  0x11   :  { %118 = vmatpush.msra.mxu1 %v47_v20  ;;  %216 = vmatpush.msra.mxu3 %v47_v20  ;;  %v66_v32 = vmul.f32 2.0, %v62_v25  ;;  %v32_v39 = vld [vmem:[%s740_s3 + $0x10] sm:$0xff]  ;;  %v31_v43 = vld [vmem:[%s740_s3 + $0x8] sm:$0xff]  ;;  %v30_v45 = vld [vmem:[%s740_s3] sm:$0xff]  ;;  %v442_v46 = vadd.f32 -1.0, %v63_v40  ;;  %v448_v48 = vadd.f32 -1.0, %v165_v42 }
  0x12   :  { %89 = vmatpush.msra.mxu0 %v37_v21  ;;  %187 = vmatpush.msra.mxu2 %v37_v21  ;;  %v168_v35 = vmul.f32 2.0, %v164_v29  ;;  %v691_v44 = vld [vmem:[%s737_s0 + $0x8] sm:$0xff]  ;;  %v65_v50 = vmul.f32 2.0, %v61_v47  ;;  %v167_v51 = vmul.f32 2.0, %v163_v49  ;;  %v470_v54 = vld [vmem:[%s741_s4] ss:$0 sm:$0xff] }
  0x13   :  { %119 = vmatpush.msra.mxu1 %v46_v23  ;;  %217 = vmatpush.msra.mxu3 %v46_v23  ;;  %v445_v38 = vadd.f32 -1.0, %v66_v32  ;;  %v249_v61 = vld [vmem:[%s742_s5] sm:$0xff]  ;;  %s532_s4 = smov 124   ;;  %s535_s27 = smov 16  }
  0x14   :  { %90 = vmatpush.msra.mxu0 %v36_v27  ;;  %446 = vmatmul.msk.f32.vlgmr.msra.gmra.mxu1 %vm74_vm0, %v443_v24  ;;  %v451_v41 = vadd.f32 -1.0, %v168_v35  ;;  %v444_v52 = vadd.f32 -1.0, %v65_v50  ;;  %v450_v53 = vadd.f32 -1.0, %v167_v51  ;;  %259 = vst [vmem:[#allocation1] ss:$2 sm:$0xff] %v249_v61  ;;  %s536_s28 = smov [#allocation4]  }
  0x15   :  { %188 = vmatpush.msra.mxu2 %v36_v27  ;;  %452 = vmatmul.msk.f32.vlgmr.msra.gmra.mxu3 %vm74_vm0, %v449_v28  ;;  %s426_s29 = sshll.u32 %s536_s28, 4  ;;  %s427_s29 = int_to_ptr.vmem [resolvable:$true] %s426_s29 }
  0x16   :  { %91 = vmatpush.msra.mxu0 %v35_v30  ;;  %139 = vrot.lane.b32.xlu0 %v665_v31, %s531_s9 }
  0x17   :  { %189 = vmatpush.msra.mxu2 %v35_v30 }
  0x18   :  { %92 = vmatpush.msra.mxu0 %v34_v33 }
  0x19   :  { %190 = vmatpush.msra.mxu2 %v34_v33 }
  0x1a   :  { %93 = vmatpush.msra.mxu0 %v33_v37 }
  0x1b   :  { %191 = vmatpush.msra.mxu2 %v33_v37  ;;  %v261_v10 = vld.sshfl [vmem:[#allocation1 + $0x8] sm:$0xff pattern:$0x75316420]  ;;  %v260_v15 = vld.sshfl [vmem:[#allocation1] sm:$0xff pattern:$0x75316420] }
  0x1c   :  { %94 = vmatpush.msra.mxu0 %v32_v39  ;;  %447 = vmatmul.msk.f32.gmra.mxu1 %vm74_vm0, %v445_v38 }
  0x1d   :  { %192 = vmatpush.msra.mxu2 %v32_v39  ;;  %453 = vmatmul.msk.f32.gmra.mxu3 %vm74_vm0, %v451_v41 }
  0x1e   :  { %95 = vmatpush.msra.mxu0 %v31_v43  ;;  %141 = vrot.lane.b32.xlu0 %v691_v44, %s531_s9  ;;  %s428_s9 = sshll.u32 %s745_s8, 4  ;;  %s429_s9 = int_to_ptr.hbm [resolvable:$true] %s428_s9 }
  0x1f   :  { %193 = vmatpush.msra.mxu2 %v31_v43  ;;  %457 = vmatpush.msk.msrb.mxu3 %vm269_vm1, %v261_v10 }
  0x20   :  { %96 = vmatpush.msra.mxu0 %v30_v45  ;;  %454 = vmatpush.msk.msrb.mxu1 %vm269_vm1, %v260_v15 }
  0x21   :  { %97 = vmatmul.f32.vlgmr.msra.gmra.mxu0 %v442_v46  ;;  %194 = vmatpush.msra.mxu2 %v30_v45 }
  0x22   :  { %195 = vmatmul.f32.vlgmr.msra.gmra.mxu2 %v448_v48 }
  0x29   :  { %100 = vmatmul.f32.gmra.mxu0 %v444_v52 }
  0x2a   :  { %198 = vmatmul.f32.gmra.mxu2 %v450_v53 }
  0x88   :  { %v140_v11 = vpop.permute.xlu0 %139 }
  0x90   :  { %v142_v33 = vpop.permute.xlu0 %141 }
  0x91   :  { %v121_v55 = vpop.f32.mrf.mxu1 }
  0x98   :  { %v219_v60 = vpop.f32.mrf.mxu3 }
  0x99   :  { %v124_v1 = vpop.f32.mrf.mxu1 }
  0x9e   :  { %v98_v56 = vpop.f32.mrf.mxu0 }
  0x9f   :  { %v99_v57 = vadd.f32 %v470_v54, %v98_v56 }
  0xa0   :  { %v222_v18 = vpop.f32.mrf.mxu3 }
  0xa1   :  { %v122_v58 = vadd.f32 %v121_v55, %v99_v57 }
  0xa3   :  { %v127_v59 = vmax.f32 %v122_v58, -30.0 }
  0xa5   :  { %v129_v62 = vmin.f32 %v127_v59, 20.0  ;;  %v196_v63 = vpop.f32.mrf.mxu2 }
  0xa6   :  { %v101_v0 = vpop.f32.mrf.mxu0  ;;  %v197_v2 = vadd.f32 %v470_v54, %v196_v63  ;;  %v250_v63 = vld [vmem:[%s743_s6] sm:$0x3]  ;;  %s533_s6 = smov [#allocation2]  }
  0xa7   :  { %v131_v3 = vmul.f32 0.5, %v129_v62  ;;  %v102_v4 = vadd.f32 %v470_v54, %v101_v0  ;;  %v254_v0 = vperm.slane %v250_v63, 0  ;;  %s412_s23 = sshll.u32 %s533_s6, 4  ;;  %s413_s23 = int_to_ptr.vmem [resolvable:$true] %s412_s23 }
  0xa8   :  { %v220_v5 = vadd.f32 %v219_v60, %v197_v2 }
  0xa9   :  { %v133_v6 = vmul.f32 1.442695, %v131_v3  ;;  %v125_v7 = vadd.f32 %v124_v1, %v102_v4 }
  0xaa   :  { %v225_v8 = vmax.f32 %v220_v5, -30.0 }
  0xab   :  { %471 = vpow2.f32 %v133_v6  ;;  %v128_v9 = vmax.f32 %v125_v7, -30.0 }
  0xac   :  { %v227_v13 = vmin.f32 %v225_v8, 20.0 }
  0xad   :  { %v130_v16 = vmin.f32 %v128_v9, 20.0  ;;  %v199_v17 = vpop.f32.mrf.mxu2 }
  0xae   :  { %v229_v19 = vmul.f32 0.5, %v227_v13  ;;  %v200_v20 = vadd.f32 %v470_v54, %v199_v17 }
  0xaf   :  { %v132_v21 = vmul.f32 0.5, %v130_v16 }
  0xb0   :  { %v231_v22 = vmul.f32 1.442695, %v229_v19  ;;  %v223_v23 = vadd.f32 %v222_v18, %v200_v20 }
  0xb1   :  { %v472_v24 = vpop.eup %471  ;;  %v135_v25 = vmul.f32 1.442695, %v132_v21 }
  0xb2   :  { %v145_v27 = vmul.f32 %v472_v24, %v140_v11  ;;  %473 = vpow2.f32 %v231_v22  ;;  %v226_v28 = vmax.f32 %v223_v23, -30.0 }
  0xb3   :  { %475 = vpow2.f32 %v135_v25 }
  0xb4   :  { %149 = vrot.lane.b32.xlu1 %v145_v27, %s532_s4  ;;  %v228_v30 = vmin.f32 %v226_v28, 20.0 }
  0xb6   :  { %v230_v32 = vmul.f32 0.5, %v228_v30 }
  0xb8   :  { %v474_v34 = vpop.eup %473  ;;  %v233_v35 = vmul.f32 1.442695, %v230_v32 }
  0xb9   :  { %v476_v37 = vpop.eup %475  ;;  %v235_v38 = vmul.f32 %v474_v34, %v665_v31 }
  0xba   :  { %v146_v39 = vmul.f32 %v476_v37, %v142_v33  ;;  %477 = vpow2.f32 %v233_v35 }
  0xbb   :  { %239 = vrot.lane.b32.xlu2 %v235_v38, %s532_s4 }
  0xbc   :  { %151 = vrot.lane.b32.xlu1 %v146_v39, %s532_s4 }
  0xc0   :  { %v478_v40 = vpop.eup %477 }
  0xc1   :  { %v236_v41 = vmul.f32 %v478_v40, %v691_v44 }
  0xc3   :  { %241 = vrot.lane.b32.xlu2 %v236_v41, %s532_s4 }
 0x115   :  { %v240_v42 = vpop.permute.xlu2 %239 }
 0x116   :  { %v245_v45 = vadd.f32 %v240_v42, %v220_v5  ;;  %v255_v5 = vperm.slane %v250_v63, 1 }
 0x118   :  { %v247_v50 = vmul.f32 0.18215, %v245_v45 }
 0x11d   :  { %v242_v47 = vpop.permute.xlu2 %241 }
 0x11e   :  { %v246_v52 = vadd.f32 %v242_v47, %v223_v23 }
 0x120   :  { %v248_v54 = vmul.f32 0.18215, %v246_v52 }
 0x126   :  { %v150_v43 = vpop.permute.xlu1 %149 }
 0x127   :  { %v155_v46 = vadd.f32 %v150_v43, %v122_v58 }
 0x129   :  { %v157_v48 = vmul.f32 0.18215, %v155_v46 }
 0x12b   :  { %v251_v51 = vmul.f32 5.4899807, %v157_v48  ;;  %v349_v53 = vsub.f32 %v157_v48, %v247_v50 }
 0x12d   :  { %455 = vmatmul.msk.f32.vlgmr.msrb.gmra.mxu1 %vm262_vm2, %v251_v51  ;;  %458 = vmatmul.msk.f32.vlgmr.msrb.gmra.mxu3 %vm262_vm2, %v251_v51  ;;  %v357_v56 = vmul.f32 %v349_v53, %v349_v53 }
 0x12e   :  { %v152_v31 = vpop.permute.xlu1 %151 }
 0x12f   :  { %v156_v55 = vadd.f32 %v152_v31, %v125_v7  ;;  %v359_v58 = vsel %vm262_vm2, %v357_v56, 0.0 }
 0x131   :  { %v158_v44 = vmul.f32 0.18215, %v156_v55 }
 0x133   :  { %v252_v57 = vmul.f32 5.4899807, %v158_v44  ;;  %v350_v59 = vsub.f32 %v158_v44, %v248_v54  ;;  %v341_v54 = vlaneseq }
 0x135   :  { %v358_v60 = vmul.f32 %v350_v59, %v350_v59  ;;  %456 = vmatmul.msk.f32.gmra.mxu1 %vm262_vm2, %v252_v57  ;;  %459 = vmatmul.msk.f32.gmra.mxu3 %vm262_vm2, %v252_v57  ;;  %v342_v55 = vshrl.u32 %v341_v54, 7 }
 0x137   :  { %v360_v61 = vsel %vm262_vm2, %v358_v60, 0.0  ;;  %vm403_vm3 = vcmp.eq.s32.totalorder %v342_v55, 0 }
 0x138   :  { %v361_v62 = vadd.f32 %v360_v61, %v359_v58 }
 0x13a   :  { %362 = vadd.xlane.f32.xlu0 %v361_v62 }
 0x1aa   :  { %v291_v1 = vpop.f32.mrf.mxu1 }
 0x1ab   :  { %v292_v2 = vadd.f32 %v291_v1, %v254_v0 }
 0x1ad   :  { %v320_v3 = vmul.f32 0.5, %v292_v2  ;;  %v363_v4 = vpop.xlane.xlu0 %362 }
 0x1ae   :  { %v364_v6 = vrot.slane %v363_v4, 4 }
 0x1af   :  { %v324_v7 = vadd.f32 0.5, %v320_v3 }
 0x1b0   :  { %v365_v8 = vadd.f32 %v364_v6, %v363_v4  ;;  %v314_v9 = vpop.f32.mrf.mxu3 }
 0x1b1   :  { %v328_v10 = vmax.f32 %v324_v7, 0.0  ;;  %v315_v11 = vadd.f32 %v314_v9, %v255_v5 }
 0x1b2   :  { %v366_v13 = vrot.slane %v365_v8, 2  ;;  %v294_v15 = vpop.f32.mrf.mxu1 }
 0x1b3   :  { %v332_v16 = vmin.f32 %v328_v10, 1.0  ;;  %v321_v17 = vmul.f32 0.5, %v315_v11  ;;  %v295_v18 = vadd.f32 %v294_v15, %v254_v0 }
 0x1b4   :  { %v367_v19 = vadd.f32 %v366_v13, %v365_v8 }
 0x1b5   :  { %336 = vst [vmem:[#allocation2] sm:$0xff] %v332_v16  ;;  %v325_v20 = vadd.f32 0.5, %v321_v17  ;;  %v322_v21 = vmul.f32 0.5, %v295_v18  ;;  %v377_v37 = vsub.f32 %v332_v16, %v161_v36 }
 0x1b6   :  { %v368_v22 = vrot.slane %v367_v19, 1 }
 0x1b7   :  { %v329_v23 = vmax.f32 %v325_v20, 0.0  ;;  %v326_v24 = vadd.f32 0.5, %v322_v21  ;;  %v381_v43 = vand.u32 2147483647, %v377_v37 }
 0x1b8   :  { %v317_v25 = vpop.f32.mrf.mxu3  ;;  %v369_v27 = vadd.f32 %v368_v22, %v367_v19 }
 0x1b9   :  { %v333_v28 = vmin.f32 %v329_v23, 1.0  ;;  %v330_v30 = vmax.f32 %v326_v24, 0.0  ;;  %v318_v32 = vadd.f32 %v317_v25, %v255_v5 }
 0x1ba   :  { %460 = vpush %v369_v27 }
 0x1bb   :  { %337 = vst.msk [vmem:[#allocation2 + $0x8] sm:$0xff] %vm74_vm0, %v333_v28  ;;  %v378_v33 = vsub.f32 %v333_v28, %v162_v14  ;;  %v334_v34 = vmin.f32 %v330_v30, 1.0  ;;  %v323_v35 = vmul.f32 0.5, %v318_v32 }
 0x1bd   :  { %v382_v38 = vand.u32 2147483647, %v378_v33  ;;  %338 = vst [vmem:[#allocation2 + $0x10] sm:$0xff] %v334_v34  ;;  %v327_v39 = vadd.f32 0.5, %v323_v35  ;;  %v379_v40 = vsub.f32 %v334_v34, %v163_v49 }
 0x1bf   :  { %v331_v41 = vmax.f32 %v327_v39, 0.0  ;;  %v389_v42 = vsel %vm74_vm0, %v382_v38, 0.0  ;;  %v383_v46 = vand.u32 2147483647, %v379_v40 }
 0x1c0   :  { %v390_v47 = vadd.f32 %v389_v42, %v381_v43 }
 0x1c1   :  { %v335_v45 = vmin.f32 %v331_v41, 1.0 }
 0x1c2   :  { %v391_v36 = vadd.f32 %v390_v47, %v383_v46 }
 0x1c3   :  { %339 = vst.msk [vmem:[#allocation2 + $0x18] sm:$0xff] %vm74_vm0, %v335_v45  ;;  %v380_v14 = vsub.f32 %v335_v45, %v164_v29 }
 0x1c4   :  { %420 = dma.vmem_to_hbm [thread:$0]  %s413_s23, 512, %s415_s26, [#allocation3], %s534_s1, %s534_s1, %s535_s27  }
 0x1c5   :  { %v384_v12 = vand.u32 2147483647, %v380_v14 }
 0x1c7   :  { %v392_v48 = vsel %vm74_vm0, %v384_v12, 0.0 }
 0x1c8   :  { %v393_v50 = vadd.f32 %v392_v48, %v391_v36 }
 0x1ca   :  { %394 = vadd.xlane.f32.xlu1 %v393_v50 }
 0x1eb   :  { %s461_s2 = spop %460 }
 0x1ec   :  { %v404_v44 = vstv %s461_s2 }
 0x23d   :  { %v395_v49 = vpop.xlane.xlu1 %394 }
 0x23e   :  { %v396_v26 = vrot.slane %v395_v49, 4 }
 0x240   :  { %v397_v29 = vadd.f32 %v396_v26, %v395_v49 }
 0x242   :  { %v398_v51 = vrot.slane %v397_v29, 2 }
 0x244   :  { %v399_v52 = vadd.f32 %v398_v51, %v397_v29 }
 0x246   :  { %v400_v31 = vrot.slane %v399_v52, 1 }
 0x248   :  { %v401_v53 = vadd.f32 %v400_v31, %v399_v52 }
 0x24a   :  { %462 = vpush %v401_v53 }
 0x27b   :  { %s463_s10 = spop %462 }
 0x27c   :  { %v405_v56 = vstv %s463_s10 }
 0x27d   :  { %v406_v57 = vsel %vm403_vm3, %v404_v44, %v405_v56 }
 0x27e   :  { %407 = vst [vmem:[#allocation4] sm:$0x3] %v406_v57 }
 0x27f   :  { %431 = dma.vmem_to_hbm [thread:$0]  %s427_s29, 32, %s429_s9, [#allocation5]  }
 0x280   :  { %527 = dma.done.wait [#allocation3], 512  }
 0x281   :  { %528 = vsyncadd [#allocation3], 4294966784 }
 0x282   :  { %529 = dma.done.wait [#allocation5], 32  }
 0x283   :  { %530 = vsyncadd [#allocation5], 4294967264 }
 0x284   :  { %440 = vsyncpa [#allocation3], 1 }
 0x285   :  { %441 = vsyncpa [#allocation5], 1 }

</bundles_post_ra>
